<compile_context>
chip_gen: v6e
topology: v6e:2x2x1
jax: 0.10.0
libtpu: 0.0.40
codegen_flags: <defaults>
</compile_context>

<pallas_src>
import functools

import numpy as np
import jax
import jax.numpy as jnp
from jax import lax
from jax.experimental import pallas as pl
from jax.experimental.pallas import tpu as pltpu

LANE = 128
TARGET_GRID_STEPS = 8          # enough steps for megacore + pipeline overlap
CHUNK_ELEMS = 16 * 1024        # ~16 f32 vregs of accumulator per chunk


def _sublane_pack(dtype):
    return {4: 8, 2: 16, 1: 32}.get(jnp.dtype(dtype).itemsize, 8)


def _vmem_budget():
    """(block working-set budget, scoped vmem limit) derived from the chip."""
    try:
        cap = int(pltpu.get_tpu_info().vmem_capacity_bytes)
    except Exception:
        cap = 64 * 1024 * 1024                  # conservative (v7x per-TC VMEM)
    budget = min((3 * cap) // 8, 48 * 1024 * 1024)
    limit = min((3 * cap) // 4, 96 * 1024 * 1024, cap)
    return budget, limit


def _multipool_kernel(idx_ref, x_ref, o_ref, *, ch_rows, n_chunks):
    """One grid step = (batch b, spatial row-tile t).

    idx_ref : SMEM (S, M) int32, already remapped (no -1 / out-of-range)
    x_ref   : VMEM (C, tile_rows, cols)  -- all channels of this spatial tile
    o_ref   : VMEM (S, tile_rows, cols)  -- per-set maxima
    """
    S, M = idx_ref.shape

    def process_chunk(r0):
        rows = pl.ds(r0, ch_rows)
        for s in range(S):                        # S, M are small & static
            acc = x_ref[idx_ref[s, 0], rows, :]   # init from first member
            for j in range(1, M):
                acc = jnp.maximum(acc, x_ref[idx_ref[s, j], rows, :])
            o_ref[s, rows, :] = acc               # single store per (s, chunk)

    if n_chunks == 1:
        process_chunk(0)
    else:
        def body(k, carry):
            process_chunk(pl.multiple_of(k * ch_rows, ch_rows))
            return carry
        lax.fori_loop(0, n_chunks, body, 0, unroll=n_chunks <= 8)


def _prepare_index_table(channel_idx_sets, num_channels):
    """Host-side clean-up: -1 -> duplicate of first valid index; range check."""
    idx = np.asarray(channel_idx_sets)            # channel sets are static config
    if idx.ndim != 2:
        raise ValueError("channel_idx_sets must be (S, M)")
    if np.any(idx >= num_channels):
        raise ValueError("channel index >= number of input channels")
    valid = idx >= 0
    has_valid = valid.any(axis=1)
    first = np.where(has_valid,
                     idx[np.arange(idx.shape[0]), np.argmax(valid, axis=1)], 0)
    remapped = np.where(valid, idx, first[:, None]).astype(np.int32)
    return remapped, has_valid


def fused_multi_pool(x, channel_idx_sets):
    """x: (B, C, H, W).  channel_idx_sets: (S, M) int (pad with -1 allowed).

    Returns (B, S, H, W) in x.dtype: per-set max over the listed channels.
    Fully-padded sets return 0 (matching the module's precached d_out zeros).
    """
    B, C, H, W = x.shape
    dtype = x.dtype
    itemsize = jnp.dtype(dtype).itemsize
    sub = _sublane_pack(dtype)

    idx_remap, has_valid = _prepare_index_table(channel_idx_sets, C)
    S, M = idx_remap.shape

    # ---- layout: at most one free reshape, never a pad / slice ---------------
    HW = H * W
    if HW % LANE == 0:
        rows, cols = HW // LANE, LANE             # perfectly lane-dense
        x_k = x.reshape(B, C, rows, cols)
    else:
        rows, cols = H, W                         # NCHW as-is (W on lanes)
        x_k = x

    # ---- tile sizing ---------------------------------------------------------
    budget, vmem_limit = _vmem_budget()
    # rows processed per inner-loop chunk (bounds accumulator vreg live range)
    ch_rows = max(sub, (CHUNK_ELEMS // cols) // sub * sub)

    if rows <= ch_rows:
        tile_rows, ch_rows, n_chunks = rows, rows, 1
    else:
        bytes_per_row = 2 * (C + S) * cols * itemsize   # double-buffered in+out
        max_rows = max(ch_rows, (budget // bytes_per_row) // ch_rows * ch_rows)
        want_tiles = pl.cdiv(TARGET_GRID_STEPS, B)      # keep several grid steps
        rows_for_steps = pl.cdiv(pl.cdiv(rows, want_tiles), ch_rows) * ch_rows
        tile_rows = min(max_rows, max(ch_rows, rows_for_steps),
                        pl.cdiv(rows, ch_rows) * ch_rows)
        n_chunks = tile_rows // ch_rows
    n_tiles = pl.cdiv(rows, tile_rows)            # ragged edge handled by masking

    kernel = functools.partial(_multipool_kernel,
                               ch_rows=ch_rows, n_chunks=n_chunks)

    grid_spec = pltpu.PrefetchScalarGridSpec(
        num_scalar_prefetch=1,                    # index table rides SMEM prefetch
        grid=(B, n_tiles),                        # both axes independent
        in_specs=[
            pl.BlockSpec((None, C, tile_rows, cols),
                         lambda b, t, idx: (b, 0, t, 0)),
        ],
        out_specs=pl.BlockSpec((None, S, tile_rows, cols),
                               lambda b, t, idx: (b, 0, t, 0)),
    )

    out_k = pl.pallas_call(
        kernel,
        out_shape=jax.ShapeDtypeStruct((B, S, rows, cols), dtype),
        grid_spec=grid_spec,
        compiler_params=pltpu.CompilerParams(
            dimension_semantics=("parallel", "parallel"),
            vmem_limit_bytes=vmem_limit,
        ),
    )(jnp.asarray(idx_remap), x_k)

    out = out_k.reshape(B, S, H, W)               # free reshape in both layouts
    if not bool(has_valid.all()):
        # empty sets -> 0 (matches the original module's zero-initialized d_out)
        out = jnp.where(jnp.asarray(has_valid).reshape(1, S, 1, 1),
                        out, jnp.zeros((), dtype))
    return out


if __name__ == "__main__":
    key = jax.random.PRNGKey(0)

    def ref_pool(x, sets):
        outs = []
        for row in np.asarray(sets).tolist():
            chans = [c for c in row if c >= 0]
            if chans:
                outs.append(jnp.max(x[:, chans, :, :], axis=1))
            else:
                outs.append(jnp.zeros_like(x[:, 0]))
        return jnp.stack(outs, axis=1)

    # 1) small NCHW, HW a multiple of 128 (lane-dense path)
    B, C, H, W = 2, 8, 16, 16
    S, M = 3, 4                                   # NUM_CHANNEL_SETS, MAX_PER_SET
    x = jax.random.normal(key, (B, C, H, W), dtype=jnp.float32)
    sets = jnp.array([[0, 1, 2, 3],
                      [4, 5, 6, 7],
                      [1, 3, 5, 7]], dtype=jnp.int32)
    out = jax.block_until_ready(fused_multi_pool(x, sets))
    assert out.shape == (B, S, H, W) and out.dtype == x.dtype
    assert jnp.array_equal(out, ref_pool(x, sets)), "mismatch (dense sets)"

    # 2) variable-length sets padded with -1 (padded members must be skipped)
    padded = jnp.array([[0, 2, -1, -1],
                        [5, 5, 1, -1],
                        [7, 6, 3, 2]], dtype=jnp.int32)
    out_p = jax.block_until_ready(fused_multi_pool(x, padded))
    assert jnp.array_equal(out_p, ref_pool(x, padded)), "mismatch (padded sets)"

    # 3) HW not a multiple of 128 -> NCHW fallback layout, still no pad/slice
    k3 = jax.random.PRNGKey(1)
    x3 = jax.random.normal(k3, (2, 8, 5, 7), dtype=jnp.float32)
    out3 = jax.block_until_ready(fused_multi_pool(x3, sets))
    assert jnp.array_equal(out3, ref_pool(x3, sets)), "mismatch (ragged HW)"

    # 4) bf16 I/O (sublane packing 16) on a lane-dense shape
    x4 = jax.random.normal(k3, (2, 8, 64, 64), dtype=jnp.float32).astype(jnp.bfloat16)
    out4 = jax.block_until_ready(fused_multi_pool(x4, padded))
    assert out4.dtype == jnp.bfloat16
    assert jnp.array_equal(out4, ref_pool(x4, padded)), "mismatch (bf16)"

    # 5) larger spatial extent: multiple row tiles, ragged edge tile, chunk loop
    x5 = jax.random.normal(jax.random.PRNGKey(2), (1, 8, 384, 384),
                           dtype=jnp.float32)
    out5 = jax.block_until_ready(fused_multi_pool(x5, sets))
    assert jnp.array_equal(out5, ref_pool(x5, sets)), "mismatch (multi-tile)"

    print("KERNEL_OK")
</pallas_src>

<mosaic_0001>
module attributes {stable_mosaic.version = 11 : i64} {
  func.func @_multipool_kernel(%arg0: i32, %arg1: i32, %arg2: memref<3x4xi32, #tpu.memory_space<smem>>, %arg3: memref<1x8x2x128xf32, #tpu.memory_space<vmem>>, %arg4: memref<1x3x2x128xf32, #tpu.memory_space<vmem>>) attributes {dimension_semantics = [#tpu.dimension_semantics<parallel>, #tpu.dimension_semantics<parallel>], iteration_bounds = array<i64: 2, 1>, scalar_prefetch = 1 : i64, scratch_operands = 0 : i64, tpu.core_type = #tpu.core_type<tc>, window_params = [{transform_indices = @transform_0, window_bounds = array<i64: 1, 8, 2, 128>}, {transform_indices = @transform_1, window_bounds = array<i64: 1, 3, 2, 128>}]} {
    %c0 = arith.constant 0 : index
    %c0_0 = arith.constant 0 : index
    %0 = memref.load %arg2[%c0, %c0_0] : memref<3x4xi32, #tpu.memory_space<smem>>
    %c0_1 = arith.constant 0 : index
    %1 = arith.index_cast %0 : i32 to index
    %c0_2 = arith.constant 0 : index
    %c0_3 = arith.constant 0 : index
    %2 = vector.load %arg3[%c0_1, %1, %c0_2, %c0_3] : memref<1x8x2x128xf32, #tpu.memory_space<vmem>>, vector<1x1x2x128xf32>
    %3 = vector.shape_cast %2 : vector<1x1x2x128xf32> to vector<2x128xf32>
    %c0_4 = arith.constant 0 : index
    %c1 = arith.constant 1 : index
    %4 = memref.load %arg2[%c0_4, %c1] : memref<3x4xi32, #tpu.memory_space<smem>>
    %c0_5 = arith.constant 0 : index
    %5 = arith.index_cast %4 : i32 to index
    %c0_6 = arith.constant 0 : index
    %c0_7 = arith.constant 0 : index
    %6 = vector.load %arg3[%c0_5, %5, %c0_6, %c0_7] : memref<1x8x2x128xf32, #tpu.memory_space<vmem>>, vector<1x1x2x128xf32>
    %7 = vector.shape_cast %6 : vector<1x1x2x128xf32> to vector<2x128xf32>
    %8 = arith.maximumf %3, %7 : vector<2x128xf32>
    %c0_8 = arith.constant 0 : index
    %c2 = arith.constant 2 : index
    %9 = memref.load %arg2[%c0_8, %c2] : memref<3x4xi32, #tpu.memory_space<smem>>
    %c0_9 = arith.constant 0 : index
    %10 = arith.index_cast %9 : i32 to index
    %c0_10 = arith.constant 0 : index
    %c0_11 = arith.constant 0 : index
    %11 = vector.load %arg3[%c0_9, %10, %c0_10, %c0_11] : memref<1x8x2x128xf32, #tpu.memory_space<vmem>>, vector<1x1x2x128xf32>
    %12 = vector.shape_cast %11 : vector<1x1x2x128xf32> to vector<2x128xf32>
    %13 = arith.maximumf %8, %12 : vector<2x128xf32>
    %c0_12 = arith.constant 0 : index
    %c3 = arith.constant 3 : index
    %14 = memref.load %arg2[%c0_12, %c3] : memref<3x4xi32, #tpu.memory_space<smem>>
    %c0_13 = arith.constant 0 : index
    %15 = arith.index_cast %14 : i32 to index
    %c0_14 = arith.constant 0 : index
    %c0_15 = arith.constant 0 : index
    %16 = vector.load %arg3[%c0_13, %15, %c0_14, %c0_15] : memref<1x8x2x128xf32, #tpu.memory_space<vmem>>, vector<1x1x2x128xf32>
    %17 = vector.shape_cast %16 : vector<1x1x2x128xf32> to vector<2x128xf32>
    %18 = arith.maximumf %13, %17 : vector<2x128xf32>
    %c0_16 = arith.constant 0 : index
    %c0_17 = arith.constant 0 : index
    %c0_18 = arith.constant 0 : index
    %c0_19 = arith.constant 0 : index
    %19 = vector.load %arg4[%c0_16, %c0_17, %c0_18, %c0_19] : memref<1x3x2x128xf32, #tpu.memory_space<vmem>>, vector<1x1x2x128xf32>
    %20 = vector.shape_cast %19 : vector<1x1x2x128xf32> to vector<2x128xf32>
    %21 = vector.shape_cast %18 : vector<2x128xf32> to vector<1x1x2x128xf32>
    tpu.vector_store %arg4[%c0_16, %c0_17, %c0_18, %c0_19], %21 {strides = array<i32>} : memref<1x3x2x128xf32, #tpu.memory_space<vmem>>, vector<1x1x2x128xf32>,
    %c1_20 = arith.constant 1 : index
    %c0_21 = arith.constant 0 : index
    %22 = memref.load %arg2[%c1_20, %c0_21] : memref<3x4xi32, #tpu.memory_space<smem>>
    %c0_22 = arith.constant 0 : index
    %23 = arith.index_cast %22 : i32 to index
    %c0_23 = arith.constant 0 : index
    %c0_24 = arith.constant 0 : index
    %24 = vector.load %arg3[%c0_22, %23, %c0_23, %c0_24] : memref<1x8x2x128xf32, #tpu.memory_space<vmem>>, vector<1x1x2x128xf32>
    %25 = vector.shape_cast %24 : vector<1x1x2x128xf32> to vector<2x128xf32>
    %c1_25 = arith.constant 1 : index
    %c1_26 = arith.constant 1 : index
    %26 = memref.load %arg2[%c1_25, %c1_26] : memref<3x4xi32, #tpu.memory_space<smem>>
    %c0_27 = arith.constant 0 : index
    %27 = arith.index_cast %26 : i32 to index
    %c0_28 = arith.constant 0 : index
    %c0_29 = arith.constant 0 : index
    %28 = vector.load %arg3[%c0_27, %27, %c0_28, %c0_29] : memref<1x8x2x128xf32, #tpu.memory_space<vmem>>, vector<1x1x2x128xf32>
    %29 = vector.shape_cast %28 : vector<1x1x2x128xf32> to vector<2x128xf32>
    %30 = arith.maximumf %25, %29 : vector<2x128xf32>
    %c1_30 = arith.constant 1 : index
    %c2_31 = arith.constant 2 : index
    %31 = memref.load %arg2[%c1_30, %c2_31] : memref<3x4xi32, #tpu.memory_space<smem>>
    %c0_32 = arith.constant 0 : index
    %32 = arith.index_cast %31 : i32 to index
    %c0_33 = arith.constant 0 : index
    %c0_34 = arith.constant 0 : index
    %33 = vector.load %arg3[%c0_32, %32, %c0_33, %c0_34] : memref<1x8x2x128xf32, #tpu.memory_space<vmem>>, vector<1x1x2x128xf32>
    %34 = vector.shape_cast %33 : vector<1x1x2x128xf32> to vector<2x128xf32>
    %35 = arith.maximumf %30, %34 : vector<2x128xf32>
    %c1_35 = arith.constant 1 : index
    %c3_36 = arith.constant 3 : index
    %36 = memref.load %arg2[%c1_35, %c3_36] : memref<3x4xi32, #tpu.memory_space<smem>>
    %c0_37 = arith.constant 0 : index
    %37 = arith.index_cast %36 : i32 to index
    %c0_38 = arith.constant 0 : index
    %c0_39 = arith.constant 0 : index
    %38 = vector.load %arg3[%c0_37, %37, %c0_38, %c0_39] : memref<1x8x2x128xf32, #tpu.memory_space<vmem>>, vector<1x1x2x128xf32>
    %39 = vector.shape_cast %38 : vector<1x1x2x128xf32> to vector<2x128xf32>
    %40 = arith.maximumf %35, %39 : vector<2x128xf32>
    %c0_40 = arith.constant 0 : index
    %c1_41 = arith.constant 1 : index
    %c0_42 = arith.constant 0 : index
    %c0_43 = arith.constant 0 : index
    %41 = vector.load %arg4[%c0_40, %c1_41, %c0_42, %c0_43] : memref<1x3x2x128xf32, #tpu.memory_space<vmem>>, vector<1x1x2x128xf32>
    %42 = vector.shape_cast %41 : vector<1x1x2x128xf32> to vector<2x128xf32>
    %43 = vector.shape_cast %40 : vector<2x128xf32> to vector<1x1x2x128xf32>
    tpu.vector_store %arg4[%c0_40, %c1_41, %c0_42, %c0_43], %43 {strides = array<i32>} : memref<1x3x2x128xf32, #tpu.memory_space<vmem>>, vector<1x1x2x128xf32>,
    %c2_44 = arith.constant 2 : index
    %c0_45 = arith.constant 0 : index
    %44 = memref.load %arg2[%c2_44, %c0_45] : memref<3x4xi32, #tpu.memory_space<smem>>
    %c0_46 = arith.constant 0 : index
    %45 = arith.index_cast %44 : i32 to index
    %c0_47 = arith.constant 0 : index
    %c0_48 = arith.constant 0 : index
    %46 = vector.load %arg3[%c0_46, %45, %c0_47, %c0_48] : memref<1x8x2x128xf32, #tpu.memory_space<vmem>>, vector<1x1x2x128xf32>
    %47 = vector.shape_cast %46 : vector<1x1x2x128xf32> to vector<2x128xf32>
    %c2_49 = arith.constant 2 : index
    %c1_50 = arith.constant 1 : index
    %48 = memref.load %arg2[%c2_49, %c1_50] : memref<3x4xi32, #tpu.memory_space<smem>>
    %c0_51 = arith.constant 0 : index
    %49 = arith.index_cast %48 : i32 to index
    %c0_52 = arith.constant 0 : index
    %c0_53 = arith.constant 0 : index
    %50 = vector.load %arg3[%c0_51, %49, %c0_52, %c0_53] : memref<1x8x2x128xf32, #tpu.memory_space<vmem>>, vector<1x1x2x128xf32>
    %51 = vector.shape_cast %50 : vector<1x1x2x128xf32> to vector<2x128xf32>
    %52 = arith.maximumf %47, %51 : vector<2x128xf32>
    %c2_54 = arith.constant 2 : index
    %c2_55 = arith.constant 2 : index
    %53 = memref.load %arg2[%c2_54, %c2_55] : memref<3x4xi32, #tpu.memory_space<smem>>
    %c0_56 = arith.constant 0 : index
    %54 = arith.index_cast %53 : i32 to index
    %c0_57 = arith.constant 0 : index
    %c0_58 = arith.constant 0 : index
    %55 = vector.load %arg3[%c0_56, %54, %c0_57, %c0_58] : memref<1x8x2x128xf32, #tpu.memory_space<vmem>>, vector<1x1x2x128xf32>
    %56 = vector.shape_cast %55 : vector<1x1x2x128xf32> to vector<2x128xf32>
    %57 = arith.maximumf %52, %56 : vector<2x128xf32>
    %c2_59 = arith.constant 2 : index
    %c3_60 = arith.constant 3 : index
    %58 = memref.load %arg2[%c2_59, %c3_60] : memref<3x4xi32, #tpu.memory_space<smem>>
    %c0_61 = arith.constant 0 : index
    %59 = arith.index_cast %58 : i32 to index
    %c0_62 = arith.constant 0 : index
    %c0_63 = arith.constant 0 : index
    %60 = vector.load %arg3[%c0_61, %59, %c0_62, %c0_63] : memref<1x8x2x128xf32, #tpu.memory_space<vmem>>, vector<1x1x2x128xf32>
    %61 = vector.shape_cast %60 : vector<1x1x2x128xf32> to vector<2x128xf32>
    %62 = arith.maximumf %57, %61 : vector<2x128xf32>
    %c0_64 = arith.constant 0 : index
    %c2_65 = arith.constant 2 : index
    %c0_66 = arith.constant 0 : index
    %c0_67 = arith.constant 0 : index
    %63 = vector.load %arg4[%c0_64, %c2_65, %c0_66, %c0_67] : memref<1x3x2x128xf32, #tpu.memory_space<vmem>>, vector<1x1x2x128xf32>
    %64 = vector.shape_cast %63 : vector<1x1x2x128xf32> to vector<2x128xf32>
    %65 = vector.shape_cast %62 : vector<2x128xf32> to vector<1x1x2x128xf32>
    tpu.vector_store %arg4[%c0_64, %c2_65, %c0_66, %c0_67], %65 {strides = array<i32>} : memref<1x3x2x128xf32, #tpu.memory_space<vmem>>, vector<1x1x2x128xf32>,
    return
  }
  func.func @transform_0(%arg0: i32, %arg1: i32, %arg2: memref<3x4xi32, #tpu.memory_space<smem>>) -> (i32, i32, i32, i32) {
    %c0_i32 = arith.constant 0 : i32
    %c0_i32_0 = arith.constant 0 : i32
    %c0_i32_1 = arith.constant 0 : i32
    return %arg0, %c0_i32, %arg1, %c0_i32_0 : i32, i32, i32, i32
  }
  func.func @transform_1(%arg0: i32, %arg1: i32, %arg2: memref<3x4xi32, #tpu.memory_space<smem>>) -> (i32, i32, i32, i32) {
    %c0_i32 = arith.constant 0 : i32
    %c0_i32_0 = arith.constant 0 : i32
    %c0_i32_1 = arith.constant 0 : i32
    return %arg0, %c0_i32, %arg1, %c0_i32_0 : i32, i32, i32, i32
  }
}

</mosaic_0001>

<bundles_post_ra>
// kernel: tpu_custom_call.1
= control target key start
LH: loop header
LB: loop body
LE: loop exit
PB: predicated region body
PF: predicated region fallthrough
CT: control target
= control target key end

     0   :  { %s570_s9 = smov [#allocation3]   ;;  %s758_s0 = inlined_call_operand.hbm [shape: s32[3,4], index: 0, kind: input, shape index: {}]   ;;  %s759_s1 = inlined_call_operand.hbm [shape: f32[2,8,2,128], index: 1, kind: input, shape index: {}]   ;;  %s760_s2 = inlined_call_operand.hbm [shape: f32[2,3,2,128], index: 2, kind: output, shape index: {}]  }
   0x1   :  { %761 = sst [smem:[#allocation11_spill]] %s759_s1 }
   0x2   :  { %8 = dma.hbm_to_smem %s758_s0, 64, %s570_s9, [#allocation2] }
   0x3   :  { %536 = dma.done.wait [#allocation2], 64 }
   0x4   :  { %537 = vsyncadd [#allocation2], 4294967232 }
   0x5   :  { %10 = sfence }
   0x6   :  { %11 = vsyncpa [#allocation5], 0 }
   0x7   :  { %13 = vsyncpa [#allocation5 + $0x1], 0 }
   0x8   :  { %14 = vsyncpa [#allocation6], 0 }
   0x9   :  { %16 = vsyncpa [#allocation6 + $0x1], 0  ;;  %s595_s12 = smov 0   ;;  %s597_s13 = smov 0  }
   0xa   :  { %s599_s14 = smov 0   ;;  %s601_s15 = smov 0  }
   0xb   :  { %s603_s16 = smov 0   ;;  %s605_s17 = smov 0  }
   0xc LB: > { %s343_s0 = sadd.s32 4294967295, %s568_s17   ;;  %s344_s18 = sadd.s32 4294967294, %s568_s17   ;;  %s568_s17 = sphi %s605_s17, %s22_s17   ;;  %s564_s16 = sphi %s603_s16, %s774_s16   ;;  %s560_s15 = sphi %s601_s15, %s773_s15   ;;  %s556_s14 = sphi %s599_s14, %s772_s14   ;;  %s552_s13 = sphi %s597_s13, %s771_s13   ;;  %s548_s12 = sphi %s595_s12, %s770_s12  }
   0xd   : > { %s34_s19 = sadd.s32 1, %s564_s16  ;;  %s43_s20 = sadd.s32 1, %s556_s14 }
   0xe   : > { %p36_p0 = scmp.ge.s32.totalorder %s34_s19, 2  ;;  %p50_p1 = scmp.ne.s32.totalorder %s556_s14, %s552_s13 }
   0xf   : > { %p51_p2 = scmp.eq.s32.totalorder %s568_s17, 0  ;;  %p56_p3 = scmp.ne.s32.totalorder %s552_s13, %s548_s12 }
  0x10   : > { %s776_s19 = smov (%p36_p0, %s34_s19), 0  ;;  %p57_p5 = scmp.eq.s32.totalorder %s343_s0, 0 }
  0x11   : > { %p636_p4 = por %p51_p2, %p50_p1  ;;  %s38_s22 = ssub.s32 %s564_s16, %s776_s19 }
  0x12   : > { %p82_p6 = scmp.eq.s32.totalorder %s343_s0, 1  ;;  %p41_p7 = scmp.eq.s32.totalorder %s38_s22, 0 }
  0x13   : > { %p642_p8 = por %p57_p5, %p56_p3  ;;  %p88_p10 = scmp.eq.s32.totalorder %s344_s18, 1 }
  0x14   : > { %p646_p9 = por %p82_p6, %p50_p1  ;;  %p395_p13 = scmp.lt.s32.totalorder %s568_s17, 2 }
  0x15   : > { %s651_s25 = scalar_select %p41_p7, %s556_s14, %s43_s20  }
  0x16   : > { %p653_p11 = por %p88_p10, %p56_p3  ;;  %s108_s27 = sand.u32 1, %s556_s14  }
  0x17   : > { %s347_s28 = sshll.u32 %s108_s27, 4  ;;  %s380_s29 = sshll.u32 %s564_s16, 8 }
  0x18   : > { %s766_s1 = sld [smem:[#allocation11_spill]]  ;;  %s112_s5 = scalar_lea.vmem [#allocation4], %s347_s28 }
  0x19   : > { %s120_s6 = sshll.u32 %s112_s5, 4  ;;  %p666_p0 = pnand %p395_p13, %p636_p4  ;;  %s121_s6 = int_to_ptr.vmem [resolvable:$true] %s120_s6 }
  0x1a   : > { %p350_p1 = scmp.ge.s32.totalorder %s568_s17, 1  ;;  %s109_s8 = scalar_lea.sflag [#allocation5], %s108_s27 }
  0x1b   : > { %p460_p2 = pneg %p666_p0  ;;  %s471_s9 = scalar_lea.vmem %s121_s6, 256 }
  0x1c   : > { %p472_p3 = scmp.ne.s32.totalorder %s121_s6, %s471_s9  ;;  %s571_s10 = smov [#allocation4]  }
  0x1d   : > { %s476_s11 = sshll.u32 %s571_s10, 4  ;;  %s477_s11 = int_to_ptr.vmem [resolvable:$false] %s476_s11 }
  0x1e   : > { %s119_s4 = scalar_lea.hbm %s766_s1, %s380_s29  ;;  %p474_p5 = pnand %p472_p3, %p460_p2 }
  0x1f   : > { %s478_s0 = scalar_lea.vmem %s477_s11, 512  ;;  %p479_p7 = scmp.lt.s32.totalorder %s121_s6, %s477_s11 }
  0x20   : > { %p475_p6 = pneg %p474_p5  ;;  %p480_p10 = scmp.lt.s32.totalorder %s478_s0, %s471_s9 }
  0x22   : > { %p481_p12 = por %p480_p10, %p479_p7 }
  0x24   : > { %p482_p4 = pnand %p481_p12, %p475_p6 }
  0x26   : > { %485 = shalt.err (!%p482_p4)
}
  0x27   : > { %s572_s18 = smov 32   ;;  %s573_s20 = smov 2  }
  0x28   : > { %390 = dma.hbm_to_vmem [thread:$0]  (!%p666_p0), %s119_s4, 256, %s121_s6, %s109_s8, %s572_s18, %s572_s18, %s573_s20  }
  0x29   : > { %p128_p13 = scmp.lt.s32.totalorder %s568_s17, 3 }
  0x2b   : > { %p129_p2 = pnand %p350_p1, %p128_p13 }
  0x2c   : > { %s679_s21 = sand.u32 (!%p129_p2), 1, %s552_s13  }
  0x2d   : > { %132 = sbr.rel (%p129_p2) target bundleno = 98 (0x62), region = 24  ;;  %s351_s22 = sshll.u32 (!%p129_p2), %s679_s21, 4 }
  0x2e   : > { %s135_s27 = scalar_lea.sflag (!%p129_p2), [#allocation5], %s679_s21  ;;  %s683_s28 = scalar_lea.vmem (!%p129_p2), [#allocation4], %s351_s22 }
  0x32   : > { %539 = dma.done.wait (%p642_p8), %s135_s27, 256  }
  0x33   : > { %541 = vsyncadd (%p642_p8), %s135_s27, 4294967040  ;;  %s157_s29 = sld [smem:[#allocation3]] }
  0x34   : > { %s353_s3 = sld [smem:[#allocation3 + $0x1]] }
  0x35   : > { %s355_s4 = sld [smem:[#allocation3 + $0x2]] }
  0x36   : > { %s357_s5 = sld [smem:[#allocation3 + $0x3]] }
  0x37   : > { %s359_s6 = sld [smem:[#allocation3 + $0x80]] }
  0x38   : > { %s361_s7 = sld [smem:[#allocation3 + $0x81]] }
  0x39   : > { %s352_s8 = sshll.u32 %s157_s29, 1  ;;  %s363_s9 = sld [smem:[#allocation3 + $0x82]] }
  0x3a   : > { %s159_s10 = scalar_lea.vmem %s683_s28, %s352_s8 [#allocation4]  ;;  %s354_s11 = sshll.u32 %s353_s3, 1 }
  0x3b   : > { %v160_v0 = vld [vmem:[%s159_s10] sm:$0x3]  ;;  %s163_s23 = scalar_lea.vmem %s683_s28, %s354_s11 [#allocation4]  ;;  %s356_s0 = sshll.u32 %s355_s4, 1 }
  0x3c   : > { %v164_v1 = vld [vmem:[%s163_s23] sm:$0x3]  ;;  %s168_s18 = scalar_lea.vmem %s683_s28, %s356_s0 [#allocation4]  ;;  %s358_s20 = sshll.u32 %s357_s5, 1 }
  0x3d   : > { %v165_v2 = vmax.f32 %v160_v0, %v164_v1  ;;  %v169_v3 = vld [vmem:[%s168_s18] sm:$0x3]  ;;  %s173_s22 = scalar_lea.vmem %s683_s28, %s358_s20 [#allocation4]  ;;  %s360_s27 = sshll.u32 %s359_s6, 1 }
  0x3e   : > { %v174_v4 = vld [vmem:[%s173_s22] sm:$0x3]  ;;  %s179_s30 = scalar_lea.vmem %s683_s28, %s360_s27 [#allocation4]  ;;  %s362_s1 = sshll.u32 %s361_s7, 1 }
  0x3f   : > { %v170_v5 = vmax.f32 %v165_v2, %v169_v3  ;;  %v180_v6 = vld [vmem:[%s179_s30] sm:$0x3]  ;;  %s183_s29 = scalar_lea.vmem %s683_s28, %s362_s1 [#allocation4]  ;;  %s364_s3 = sshll.u32 %s363_s9, 1 }
  0x40   : > { %v184_v7 = vld [vmem:[%s183_s29] sm:$0x3]  ;;  %s188_s4 = scalar_lea.vmem %s683_s28, %s364_s3 [#allocation4]  ;;  %s365_s8 = sld [smem:[#allocation3 + $0x83]] }
  0x41   : > { %v175_v8 = vmax.f32 %v170_v5, %v174_v4  ;;  %v185_v9 = vmax.f32 %v180_v6, %v184_v7  ;;  %s368_s5 = sld [smem:[#allocation3 + $0x100]]  ;;  %v189_v10 = vld [vmem:[%s188_s4] sm:$0x3]  ;;  %s768_s10 = smul.u32 6, %s679_s21 }
  0x42   : > { %s370_s6 = sld [smem:[#allocation3 + $0x101]]  ;;  %s382_s9 = smul.u32 96, %s560_s15 }
  0x43   : > { %s156_s11 = scalar_lea.vmem [#allocation7], %s768_s10  ;;  %s372_s7 = sld [smem:[#allocation3 + $0x102]]  ;;  %v190_v11 = vmax.f32 %v185_v9, %v189_v10 }
  0x44   : > { %176 = vst [vmem:[%s156_s11] sm:$0x3] %v175_v8  ;;  %s374_s30 = sld [smem:[#allocation3 + $0x103]]  ;;  %s234_s4 = sshll.u32 %s156_s11, 4  ;;  %s705_s4 = int_to_ptr.vmem [resolvable:$true] %s234_s4 }
  0x45   : > { %s220_s10 = scalar_lea.sflag [#allocation6], %s679_s21 }
  0x46   : > { %s366_s1 = sshll.u32 %s365_s8, 1 }
  0x47   : > { %s193_s23 = scalar_lea.vmem %s683_s28, %s366_s1 [#allocation4]  ;;  %s369_s0 = sshll.u32 %s368_s5, 1 }
  0x48   : > { %v194_v12 = vld [vmem:[%s193_s23] sm:$0x3]  ;;  %s200_s18 = scalar_lea.vmem %s683_s28, %s369_s0 [#allocation4]  ;;  %s371_s20 = sshll.u32 %s370_s6, 1 }
  0x49   : > { %v195_v13 = vmax.f32 %v190_v11, %v194_v12  ;;  %v201_v14 = vld [vmem:[%s200_s18] sm:$0x3]  ;;  %s204_s22 = scalar_lea.vmem %s683_s28, %s371_s20 [#allocation4]  ;;  %s373_s27 = sshll.u32 %s372_s7, 1 }
  0x4a   : > { %v205_v15 = vld [vmem:[%s204_s22] sm:$0x3]  ;;  %s209_s29 = scalar_lea.vmem %s683_s28, %s373_s27 [#allocation4]  ;;  %s375_s3 = sshll.u32 %s374_s30, 1 }
  0x4b   : > { %367 = vst [vmem:[%s156_s11 + $0x2] sm:$0x3] %v195_v13  ;;  %v206_v16 = vmax.f32 %v201_v14, %v205_v15  ;;  %v210_v17 = vld [vmem:[%s209_s29] sm:$0x3]  ;;  %s214_s15 = scalar_lea.vmem %s683_s28, %s375_s3 [#allocation4]  ;;  %s710_s6 = scalar_lea.hbm %s760_s2, %s382_s9 }
  0x4c   : > { %v215_v18 = vld [vmem:[%s214_s15] sm:$0x3]  ;;  %s486_s7 = scalar_lea.vmem %s705_s4, 96  ;;  %s574_s28 = smov [#allocation7]  }
  0x4d   : > { %v211_v19 = vmax.f32 %v206_v16, %v210_v17  ;;  %p487_p8 = scmp.ne.s32.totalorder %s705_s4, %s486_s7  ;;  %s490_s30 = sshll.u32 %s574_s28, 4  ;;  %s491_s30 = int_to_ptr.vmem [resolvable:$false] %s490_s30 }
  0x4e   : > { %s492_s1 = scalar_lea.vmem %s491_s30, 192  ;;  %p493_p1 = scmp.lt.s32.totalorder %s705_s4, %s491_s30 }
  0x4f   : > { %v216_v20 = vmax.f32 %v211_v19, %v215_v18  ;;  %p488_p12 = pnand %p487_p8, %p646_p9  ;;  %p494_p3 = scmp.lt.s32.totalorder %s492_s1, %s486_s7 }
  0x51   : > { %376 = vst [vmem:[%s156_s11 + $0x4] sm:$0x3] %v216_v20  ;;  %p489_p0 = pneg %p488_p12  ;;  %p495_p5 = por %p494_p3, %p493_p1 }
  0x53   : > { %p496_p6 = pnand %p495_p5, %p489_p0 }
  0x55   : > { %499 = shalt.err (!%p496_p6)
}
  0x56   : > { %s500_s11 = scalar_lea.hbm %s710_s6, 96  ;;  %s504_s0 = scalar_lea.hbm %s760_s2, 192 }
  0x57   : > { %p501_p7 = scmp.ne.s32.totalorder %s710_s6, %s500_s11  ;;  %p505_p13 = scmp.lt.s32.totalorder %s710_s6, %s760_s2 }
  0x58   : > { %p506_p2 = scmp.lt.s32.totalorder %s504_s0, %s500_s11 }
  0x59   : > { %p502_p10 = pnand %p501_p7, %p646_p9 }
  0x5a   : > { %p507_p8 = por %p506_p2, %p505_p13 }
  0x5b   : > { %p503_p4 = pneg %p502_p10 }
  0x5d   : > { %p508_p12 = pnand %p507_p8, %p503_p4 }
  0x5f   : > { %511 = shalt.err (!%p508_p12)
}
  0x60   : > { %s575_s22 = smov 32   ;;  %s576_s27 = smov 2  }
  0x61   : > { %385 = dma.vmem_to_hbm [thread:$0]  (%p646_p9), %s705_s4, 96, %s710_s6, %s220_s10, %s575_s22, %s575_s22, %s576_s27  }
  0x62 PF: > { %s249_s29 = sand.u32 1, %s548_s12   ;;  %p769_p0 = scmp.ge.s32.totalorder %s568_s17, 2 }
  0x63   : > { %s250_s3 = scalar_lea.sflag [#allocation6], %s249_s29 }
  0x64   : > { %p392_p1 = pnand %p769_p0, %p653_p11 }
  0x66   : > { %p393_p3 = pneg %p392_p1 }
  0x68   : > { %543 = dma.done.wait (%p393_p3), %s250_s3, 96  }
  0x69   : > { %545 = vsyncadd (%p393_p3), %s250_s3, 4294967200  ;;  %s22_s17 = sadd.s32 1, %s568_s17   ;;  %s770_s12 = smov %s552_s13 }
  0x6a   : > { %p19_p5 = scmp.ge.s32.totalorder %s22_s17, 4   ;;  %s771_s13 = smov %s556_s14 }
  0x6b   : > { %s772_s14 = smov %s651_s25  ;;  %s773_s15 = smov %s564_s16 }
  0x6c   : > { %s774_s16 = smov %s776_s19  ;;  %21 = sbr.rel (!%p19_p5) target bundleno = 12 (0xc), region = 83 }
  0x71   :  { %255 = vsyncpa [#allocation5], 1 }
  0x72   :  { %257 = vsyncpa [#allocation5 + $0x1], 1 }
  0x73   :  { %258 = vsyncpa [#allocation6], 1 }
  0x74   :  { %260 = vsyncpa [#allocation6 + $0x1], 1 }

</bundles_post_ra>
